<compile_context>
chip_gen: v5e
topology: v5e:2x2
jax: 0.10.0
libtpu: 0.0.40
codegen_flags: <defaults>
</compile_context>

<pallas_src>
import functools

import jax
import jax.numpy as jnp
from jax import lax
from jax.experimental import pallas as pl
from jax.experimental.pallas import tpu as pltpu

_F32_MIN = float(jnp.finfo(jnp.float32).min)
_MAX_TILE_ROWS = 1024


def _ls_ce_kernel(x_ref, tgt_ref, out_ref, m_acc, s_acc, p_acc, x_acc, *,
                  smoothing: float, num_classes: int, tile_c: int):
    """Grid = (row_tiles, class_tiles); class axis is an online-LSE reduction."""
    c = pl.program_id(1)
    num_c = pl.num_programs(1)

    @pl.when(c == 0)
    def _init():
        m_acc[...] = jnp.full_like(m_acc, _F32_MIN)
        s_acc[...] = jnp.zeros_like(s_acc)
        p_acc[...] = jnp.zeros_like(p_acc)
        x_acc[...] = jnp.zeros_like(x_acc)

    x = x_ref[...].astype(jnp.float32)                    # (TN, TC)
    tgt = tgt_ref[...]                                    # (TN, 1) int32

    # Online logsumexp across class tiles (degenerates cleanly when num_c == 1).
    m_prev = m_acc[...]
    m_new = jnp.maximum(m_prev, jnp.max(x, axis=-1, keepdims=True))
    s_acc[...] = (s_acc[...] * jnp.exp(m_prev - m_new)
                  + jnp.sum(jnp.exp(x - m_new), axis=-1, keepdims=True))
    m_acc[...] = m_new

    # Gather-by-one-hot and plain row sum on the RAW logits: independent of the
    # max pass (better ILP) and no extra live (TN, TC) f32 intermediate.
    col_ids = c * tile_c + lax.broadcasted_iota(jnp.int32, x.shape, 1)
    p_acc[...] += jnp.sum(jnp.where(col_ids == tgt, x, 0.0), axis=-1, keepdims=True)
    x_acc[...] += jnp.sum(x, axis=-1, keepdims=True)

    @pl.when(c == num_c - 1)
    def _finalize():
        confidence = 1.0 - smoothing
        log_z = m_acc[...] + jnp.log(s_acc[...])                 # full row logsumexp
        nll_loss = log_z - p_acc[...]                            # = -logprob[target]
        smooth_loss = log_z - x_acc[...] * (1.0 / num_classes)   # = -mean(logprobs)
        out_ref[...] = confidence * nll_loss + smoothing * smooth_loss


def _round_up(v: int, m: int) -> int:
    return ((v + m - 1) // m) * m


def _vmem_capacity_bytes() -> int:
    """Physical VMEM per core; falls back to 128 MiB (v5e/v6e) if unqueryable."""
    try:
        cap = getattr(pltpu.get_tpu_info(), "vmem_capacity_bytes", None)
        if cap:
            return int(cap)
    except Exception:
        pass
    return 128 * 2**20


def _pick_tiles(N: int, C: int, budget_f32: int):
    """Pick (tile_n, tile_c) against a per-buffer f32 working-tile budget."""
    min_rows = min(max(8, _round_up(min(N, 256), 8)), 256)

    # Keep the full class dim unless it would force the row tile below min_rows.
    if C * 4 * min_rows <= budget_f32:
        tile_c = C
    else:
        tile_c = C  # fallback: full C (row tile will shrink)
        max_tc = max(128, (budget_f32 // (4 * min_rows)) // 128 * 128)
        for tc in range(min(max_tc, C) // 128 * 128, 0, -128):
            if C % tc == 0:
                tile_c = tc
                break

    tile_n = budget_f32 // (4 * tile_c)
    tile_n = max(8, min(_MAX_TILE_ROWS, (tile_n // 8) * 8))
    # Guarantee >=2 row tiles so the "parallel" axis shards across both
    # TensorCores on v7x (a single-step grid leaves one TC idle).
    if N >= 16:
        tile_n = min(tile_n, _round_up(N, 16) // 2)
    else:
        tile_n = min(tile_n, _round_up(N, 8))
    tile_n = max(8, (tile_n // 8) * 8)
    return tile_n, tile_c


def label_smoothing_cross_entropy(x, target, smoothing: float = 0.1):
    """x: (N, C) logits; target: (N,) int class indices. Returns scalar f32 loss."""
    N, C = x.shape
    itemsize = jnp.dtype(x.dtype).itemsize

    vmem_cap = _vmem_capacity_bytes()
    vmem_limit_cap = (vmem_cap * 3) // 4           # ~96 MiB v5e/v6e, ~48 MiB v7x
    budget_f32 = max(2 * 2**20, vmem_cap // 10)    # per (TN, TC) f32 working tile

    tile_n, tile_c = _pick_tiles(N, C, budget_f32)
    n_pad = _round_up(N, tile_n)
    num_row_tiles = n_pad // tile_n
    num_c_tiles = C // tile_c                      # tile_c always divides C

    x_in = x
    tgt = target.astype(jnp.int32)
    if n_pad != N:                                 # padded rows are sliced off below
        x_in = jnp.pad(x_in, ((0, n_pad - N), (0, 0)))
        tgt = jnp.pad(tgt, (0, n_pad - N))
    tgt2d = tgt.reshape(n_pad, 1)

    kernel = functools.partial(_ls_ce_kernel, smoothing=float(smoothing),
                               num_classes=int(C), tile_c=int(tile_c))

    # Scoped VMEM: double-buffered x tile (native dtype) + ~4 (TN,TC) f32 temps
    # + small target/output/scratch slack, with headroom; capped per generation.
    in_bytes = tile_n * tile_c * itemsize
    work_bytes = tile_n * tile_c * 4
    est = 2 * in_bytes + 4 * work_bytes + (1 << 20)
    vmem_limit = int(min(vmem_limit_cap, max(32 * 2**20, int(est * 1.25))))

    per_row = pl.pallas_call(
        kernel,
        out_shape=jax.ShapeDtypeStruct((n_pad, 1), jnp.float32),
        grid_spec=pltpu.PrefetchScalarGridSpec(
            num_scalar_prefetch=0,
            grid=(num_row_tiles, num_c_tiles),
            in_specs=[
                pl.BlockSpec((tile_n, tile_c), lambda i, c: (i, c)),  # logits tile
                pl.BlockSpec((tile_n, 1), lambda i, c: (i, 0)),       # target tile
            ],
            out_specs=pl.BlockSpec((tile_n, 1), lambda i, c: (i, 0)), # per-row losses
            scratch_shapes=[pltpu.VMEM((tile_n, 1), jnp.float32)] * 4,
        ),
        compiler_params=pltpu.CompilerParams(
            dimension_semantics=("parallel", "arbitrary"),
            vmem_limit_bytes=vmem_limit,
        ),
    )(x_in, tgt2d)

    return jnp.mean(per_row[:N, 0]).astype(jnp.float32)


def _reference(x, target, smoothing=0.1):
    """Pure-JAX reference mirroring the PyTorch forward."""
    confidence = 1.0 - smoothing
    logprobs = jax.nn.log_softmax(x.astype(jnp.float32), axis=-1)
    nll = -jnp.take_along_axis(logprobs, target[:, None], axis=-1)[:, 0]
    smooth = -jnp.mean(logprobs, axis=-1)
    return jnp.mean(confidence * nll + smoothing * smooth)


if __name__ == "__main__":
    key = jax.random.PRNGKey(0)
    kx, kt, kx2, kt2 = jax.random.split(key, 4)

    # Case 1: batch=16, classes=32 -> two row tiles (exercises the parallel axis).
    N, C = 16, 32
    x = jax.random.normal(kx, (N, C), dtype=jnp.float32)
    target = jax.random.randint(kt, (N,), 0, C, dtype=jnp.int32)
    loss = jax.block_until_ready(label_smoothing_cross_entropy(x, target, 0.1))
    ref = _reference(x, target, 0.1)
    assert jnp.allclose(loss, ref, atol=1e-5, rtol=1e-5), (loss, ref)

    # Case 2: batch=10 (not a multiple of 8 -> exercises row padding), classes=48.
    N2, C2 = 10, 48
    x2 = jax.random.normal(kx2, (N2, C2), dtype=jnp.float32)
    target2 = jax.random.randint(kt2, (N2,), 0, C2, dtype=jnp.int32)
    loss2 = jax.block_until_ready(label_smoothing_cross_entropy(x2, target2, 0.1))
    ref2 = _reference(x2, target2, 0.1)
    assert jnp.allclose(loss2, ref2, atol=1e-5, rtol=1e-5), (loss2, ref2)

    print("KERNEL_OK")
</pallas_src>

<mosaic_0001>
module attributes {stable_mosaic.version = 11 : i64} {
  func.func @_ls_ce_kernel(%arg0: i32, %arg1: i32, %arg2: memref<8x32xf32, #tpu.memory_space<vmem>>, %arg3: memref<8x1xi32, #tpu.memory_space<vmem>>, %arg4: memref<8x1xf32, #tpu.memory_space<vmem>>, %arg5: memref<8x1xf32, #tpu.memory_space<vmem>>, %arg6: memref<8x1xf32, #tpu.memory_space<vmem>>, %arg7: memref<8x1xf32, #tpu.memory_space<vmem>>, %arg8: memref<8x1xf32, #tpu.memory_space<vmem>>) attributes {dimension_semantics = [#tpu.dimension_semantics<parallel>, #tpu.dimension_semantics<arbitrary>], iteration_bounds = array<i64: 2, 1>, scalar_prefetch = 0 : i64, scratch_operands = 4 : i64, tpu.core_type = #tpu.core_type<tc>, window_params = [{transform_indices = @transform_0, window_bounds = array<i64: 8, 32>}, {transform_indices = @transform_1, window_bounds = array<i64: 8, 1>}, {transform_indices = @transform_2, window_bounds = array<i64: 8, 1>}]} {
    %c0_i32 = arith.constant 0 : i32
    %0 = arith.cmpi eq, %arg1, %c0_i32 : i32
    %1 = arith.extui %0 : i1 to i32
    %c0_i32_0 = arith.constant 0 : i32
    %2 = arith.cmpi ne, %1, %c0_i32_0 : i32
    scf.if %2 {
      %cst_26 = arith.constant -3.40282347E+38 : f32
      %42 = vector.broadcast %cst_26 : f32 to vector<8x1xf32>
      %c0_27 = arith.constant 0 : index
      %c0_28 = arith.constant 0 : index
      %43 = vector.load %arg5[%c0_27, %c0_28] : memref<8x1xf32, #tpu.memory_space<vmem>>, vector<8x1xf32>
      tpu.vector_store %arg5[%c0_27, %c0_28], %42 {strides = array<i32>} : memref<8x1xf32, #tpu.memory_space<vmem>>, vector<8x1xf32>,
      %cst_29 = arith.constant 0.000000e+00 : f32
      %44 = vector.broadcast %cst_29 : f32 to vector<8x1xf32>
      %c0_30 = arith.constant 0 : index
      %c0_31 = arith.constant 0 : index
      %45 = vector.load %arg6[%c0_30, %c0_31] : memref<8x1xf32, #tpu.memory_space<vmem>>, vector<8x1xf32>
      tpu.vector_store %arg6[%c0_30, %c0_31], %44 {strides = array<i32>} : memref<8x1xf32, #tpu.memory_space<vmem>>, vector<8x1xf32>,
      %cst_32 = arith.constant 0.000000e+00 : f32
      %46 = vector.broadcast %cst_32 : f32 to vector<8x1xf32>
      %c0_33 = arith.constant 0 : index
      %c0_34 = arith.constant 0 : index
      %47 = vector.load %arg7[%c0_33, %c0_34] : memref<8x1xf32, #tpu.memory_space<vmem>>, vector<8x1xf32>
      tpu.vector_store %arg7[%c0_33, %c0_34], %46 {strides = array<i32>} : memref<8x1xf32, #tpu.memory_space<vmem>>, vector<8x1xf32>,
      %cst_35 = arith.constant 0.000000e+00 : f32
      %48 = vector.broadcast %cst_35 : f32 to vector<8x1xf32>
      %c0_36 = arith.constant 0 : index
      %c0_37 = arith.constant 0 : index
      %49 = vector.load %arg8[%c0_36, %c0_37] : memref<8x1xf32, #tpu.memory_space<vmem>>, vector<8x1xf32>
      tpu.vector_store %arg8[%c0_36, %c0_37], %48 {strides = array<i32>} : memref<8x1xf32, #tpu.memory_space<vmem>>, vector<8x1xf32>,
    } else {
    }
    %c0 = arith.constant 0 : index
    %c0_1 = arith.constant 0 : index
    %3 = vector.load %arg2[%c0, %c0_1] : memref<8x32xf32, #tpu.memory_space<vmem>>, vector<8x32xf32>
    %c0_2 = arith.constant 0 : index
    %c0_3 = arith.constant 0 : index
    %4 = vector.load %arg3[%c0_2, %c0_3] : memref<8x1xi32, #tpu.memory_space<vmem>>, vector<8x1xi32>
    %c0_4 = arith.constant 0 : index
    %c0_5 = arith.constant 0 : index
    %5 = vector.load %arg5[%c0_4, %c0_5] : memref<8x1xf32, #tpu.memory_space<vmem>>, vector<8x1xf32>
    %cst = arith.constant dense<0xFF800000> : vector<8xf32>
    %6 = vector.multi_reduction <maximumf>, %3, %cst [1] : vector<8x32xf32> to vector<8xf32>
    %7 = vector.shape_cast %6 : vector<8xf32> to vector<8x1xf32>
    %8 = arith.maximumf %5, %7 : vector<8x1xf32>
    %c0_6 = arith.constant 0 : index
    %c0_7 = arith.constant 0 : index
    %9 = vector.load %arg6[%c0_6, %c0_7] : memref<8x1xf32, #tpu.memory_space<vmem>>, vector<8x1xf32>
    %10 = arith.subf %5, %8 : vector<8x1xf32>
    %11 = math.exp %10 : vector<8x1xf32>
    %12 = arith.mulf %9, %11 : vector<8x1xf32>
    %13 = vector.broadcast %8 : vector<8x1xf32> to vector<8x32xf32>
    %14 = arith.subf %3, %13 : vector<8x32xf32>
    %15 = math.exp %14 : vector<8x32xf32>
    %cst_8 = arith.constant dense<0.000000e+00> : vector<8xf32>
    %16 = vector.multi_reduction <add>, %15, %cst_8 [1] : vector<8x32xf32> to vector<8xf32>
    %17 = vector.shape_cast %16 : vector<8xf32> to vector<8x1xf32>
    %18 = arith.addf %12, %17 : vector<8x1xf32>
    %c0_9 = arith.constant 0 : index
    %c0_10 = arith.constant 0 : index
    %19 = vector.load %arg6[%c0_9, %c0_10] : memref<8x1xf32, #tpu.memory_space<vmem>>, vector<8x1xf32>
    tpu.vector_store %arg6[%c0_9, %c0_10], %18 {strides = array<i32>} : memref<8x1xf32, #tpu.memory_space<vmem>>, vector<8x1xf32>,
    %c0_11 = arith.constant 0 : index
    %c0_12 = arith.constant 0 : index
    %20 = vector.load %arg5[%c0_11, %c0_12] : memref<8x1xf32, #tpu.memory_space<vmem>>, vector<8x1xf32>
    tpu.vector_store %arg5[%c0_11, %c0_12], %8 {strides = array<i32>} : memref<8x1xf32, #tpu.memory_space<vmem>>, vector<8x1xf32>,
    %c32_i32 = arith.constant 32 : i32
    %21 = arith.muli %arg1, %c32_i32 : i32
    %22 = tpu.iota {dimensions = array<i32: 1>} : vector<8x32xi32>
    %23 = vector.broadcast %21 : i32 to vector<8x32xi32>
    %24 = arith.addi %23, %22 : vector<8x32xi32>
    %c0_13 = arith.constant 0 : index
    %c0_14 = arith.constant 0 : index
    %25 = vector.load %arg7[%c0_13, %c0_14] : memref<8x1xf32, #tpu.memory_space<vmem>>, vector<8x1xf32>
    %26 = vector.broadcast %4 : vector<8x1xi32> to vector<8x32xi32>
    %27 = arith.cmpi eq, %24, %26 : vector<8x32xi32>
    %cst_15 = arith.constant 0.000000e+00 : f32
    %28 = vector.broadcast %cst_15 : f32 to vector<8x32xf32>
    %29 = arith.select %27, %3, %28 : vector<8x32xi1>, vector<8x32xf32>
    %cst_16 = arith.constant dense<0.000000e+00> : vector<8xf32>
    %30 = vector.multi_reduction <add>, %29, %cst_16 [1] : vector<8x32xf32> to vector<8xf32>
    %31 = vector.shape_cast %30 : vector<8xf32> to vector<8x1xf32>
    %32 = arith.addf %25, %31 : vector<8x1xf32>
    %c0_17 = arith.constant 0 : index
    %c0_18 = arith.constant 0 : index
    %33 = vector.load %arg7[%c0_17, %c0_18] : memref<8x1xf32, #tpu.memory_space<vmem>>, vector<8x1xf32>
    tpu.vector_store %arg7[%c0_17, %c0_18], %32 {strides = array<i32>} : memref<8x1xf32, #tpu.memory_space<vmem>>, vector<8x1xf32>,
    %c0_19 = arith.constant 0 : index
    %c0_20 = arith.constant 0 : index
    %34 = vector.load %arg8[%c0_19, %c0_20] : memref<8x1xf32, #tpu.memory_space<vmem>>, vector<8x1xf32>
    %cst_21 = arith.constant dense<0.000000e+00> : vector<8xf32>
    %35 = vector.multi_reduction <add>, %3, %cst_21 [1] : vector<8x32xf32> to vector<8xf32>
    %36 = vector.shape_cast %35 : vector<8xf32> to vector<8x1xf32>
    %37 = arith.addf %34, %36 : vector<8x1xf32>
    %c0_22 = arith.constant 0 : index
    %c0_23 = arith.constant 0 : index
    %38 = vector.load %arg8[%c0_22, %c0_23] : memref<8x1xf32, #tpu.memory_space<vmem>>, vector<8x1xf32>
    tpu.vector_store %arg8[%c0_22, %c0_23], %37 {strides = array<i32>} : memref<8x1xf32, #tpu.memory_space<vmem>>, vector<8x1xf32>,
    %c0_i32_24 = arith.constant 0 : i32
    %39 = arith.cmpi eq, %arg1, %c0_i32_24 : i32
    %40 = arith.extui %39 : i1 to i32
    %c0_i32_25 = arith.constant 0 : i32
    %41 = arith.cmpi ne, %40, %c0_i32_25 : i32
    scf.if %41 {
      %c0_26 = arith.constant 0 : index
      %c0_27 = arith.constant 0 : index
      %42 = vector.load %arg5[%c0_26, %c0_27] : memref<8x1xf32, #tpu.memory_space<vmem>>, vector<8x1xf32>
      %c0_28 = arith.constant 0 : index
      %c0_29 = arith.constant 0 : index
      %43 = vector.load %arg6[%c0_28, %c0_29] : memref<8x1xf32, #tpu.memory_space<vmem>>, vector<8x1xf32>
      %44 = math.log %43 : vector<8x1xf32>
      %45 = arith.addf %42, %44 : vector<8x1xf32>
      %c0_30 = arith.constant 0 : index
      %c0_31 = arith.constant 0 : index
      %46 = vector.load %arg7[%c0_30, %c0_31] : memref<8x1xf32, #tpu.memory_space<vmem>>, vector<8x1xf32>
      %47 = arith.subf %45, %46 : vector<8x1xf32>
      %c0_32 = arith.constant 0 : index
      %c0_33 = arith.constant 0 : index
      %48 = vector.load %arg8[%c0_32, %c0_33] : memref<8x1xf32, #tpu.memory_space<vmem>>, vector<8x1xf32>
      %cst_34 = arith.constant 3.125000e-02 : f32
      %49 = vector.broadcast %cst_34 : f32 to vector<8x1xf32>
      %50 = arith.mulf %48, %49 : vector<8x1xf32>
      %51 = arith.subf %45, %50 : vector<8x1xf32>
      %cst_35 = arith.constant 0.899999976 : f32
      %52 = vector.broadcast %cst_35 : f32 to vector<8x1xf32>
      %53 = arith.mulf %52, %47 : vector<8x1xf32>
      %cst_36 = arith.constant 1.000000e-01 : f32
      %54 = vector.broadcast %cst_36 : f32 to vector<8x1xf32>
      %55 = arith.mulf %54, %51 : vector<8x1xf32>
      %56 = arith.addf %53, %55 : vector<8x1xf32>
      %c0_37 = arith.constant 0 : index
      %c0_38 = arith.constant 0 : index
      %57 = vector.load %arg4[%c0_37, %c0_38] : memref<8x1xf32, #tpu.memory_space<vmem>>, vector<8x1xf32>
      tpu.vector_store %arg4[%c0_37, %c0_38], %56 {strides = array<i32>} : memref<8x1xf32, #tpu.memory_space<vmem>>, vector<8x1xf32>,
    } else {
    }
    return
  }
  func.func @transform_0(%arg0: i32, %arg1: i32) -> (i32, i32) {
    %c0_i32 = arith.constant 0 : i32
    return %arg0, %arg1 : i32, i32
  }
  func.func @transform_1(%arg0: i32, %arg1: i32) -> (i32, i32) {
    %c0_i32 = arith.constant 0 : i32
    %c0_i32_0 = arith.constant 0 : i32
    return %arg0, %c0_i32 : i32, i32
  }
  func.func @transform_2(%arg0: i32, %arg1: i32) -> (i32, i32) {
    %c0_i32 = arith.constant 0 : i32
    %c0_i32_0 = arith.constant 0 : i32
    return %arg0, %c0_i32 : i32, i32
  }
}

</mosaic_0001>

<bundles_post_ra>
// kernel: tpu_custom_call.1
= control target key start
LH: loop header
LB: loop body
LE: loop exit
PB: predicated region body
PF: predicated region fallthrough
CT: control target
= control target key end

     0   :  { %s418_s9 = smov 0   ;;  %s420_s10 = smov 0   ;;  %s472_s0 = inlined_call_operand.vmem [shape: f32[16,32], index: 0, kind: input, shape index: {}]   ;;  %s473_s1 = inlined_call_operand.vmem [shape: s32[16,1], index: 1, kind: input, shape index: {}]   ;;  %s474_s2 = inlined_call_operand.vmem [shape: f32[16,1], index: 2, kind: output, shape index: {}]  }
   0x1   :  { %s422_s11 = smov 0  }
   0x2 LB: > { %s24_s12 = sadd.s32 1, %s394_s10  ;;  %p335_p0 = scmp.ge.s32.totalorder %s398_s11, 1  ;;  %s398_s11 = sphi %s422_s11, %s12_s11   ;;  %s394_s10 = sphi %s420_s10, %s476_s10   ;;  %s390_s9 = sphi %s418_s9, %s475_s9  }
   0x3   : > { %p26_p1 = scmp.ge.s32.totalorder %s24_s12, 2  ;;  %p137_p2 = scmp.lt.s32.totalorder %s398_s11, 3 }
   0x5   : > { %s478_s12 = smov (%p26_p1, %s24_s12), 0  ;;  %p138_p3 = pnand %p335_p0, %p137_p2 }
   0x6   : > { %p164_p4 = scmp.lt.s32.totalorder (!%p138_p3), %s390_s9, 1 }
   0x7   : > { %141 = sbr.rel (%p138_p3) target bundleno = 406 (0x196), region = 28 }
   0xc   : > { %vm183_vm0 = vcmask 7168   ;;  %v400_v0 = vmov -3.4028235e+38   ;;  %s480_s9 = smov (!%p164_p4, %s390_s9), 1  ;;  %vm191_vm1 = vcmask 261120   ;;  %v401_v3 = vmov 0  }
   0xd   : > { %184 = vst.msk [vmem:[#allocation2] sm:$0xff] %vm183_vm0, %v400_v0  ;;  %s437_s13 = sshll.u32 %s480_s9, 3  ;;  %368 = vset.pattern.permute.xlu0 %v401_v3  ;;  %369 = vset.pattern.permute.xlu1 %v401_v3  ;;  %v402_v4 = vmov 0.0   ;;  %v217_v11 = vlaneseq }
   0xe   : > { %s170_s16 = scalar_lea.vmem %s472_s0, %s437_s13  ;;  %185 = vst.msk [vmem:[#allocation3] sm:$0xff] %vm183_vm0, %v402_v4  ;;  %s174_s19 = scalar_lea.vmem %s473_s1, %s437_s13 }
   0xf   : > { %v188_v1 = vld [vmem:[%s170_s16] sm:$0xff]  ;;  %186 = vst.msk [vmem:[#allocation4] sm:$0xff] %vm183_vm0, %v402_v4  ;;  %v218_v13 = vand.u32 127, %v217_v11  ;;  %s178_s22 = scalar_lea.vmem %s474_s2, %s437_s13 }
  0x10   : > { %v192_v2 = vsel %vm191_vm1, %v188_v1, -inf  ;;  %187 = vst.msk [vmem:[#allocation5] sm:$0xff] %vm183_vm0, %v402_v4  ;;  %v189_v5 = vld [vmem:[%s174_s19] sm:$0xff]  ;;  %v233_v10 = vsel %vm191_vm1, %v188_v1, 0.0 }
  0x11   : > { %193 = vmax.xlane.f32.xlu0 %v192_v2  ;;  %223 = vperm.xlu1 %369, %v189_v5  }
  0x12   : > { %234 = vadd.xlane.f32.xlu2 %v233_v10 }
  0x14   : > { %v190_v6 = vld [vmem:[#allocation2] sm:$0xff] }
  0x15   : > { %v196_v29 = vld [vmem:[#allocation3] sm:$0xff] }
  0x16   : > { %v221_v24 = vld [vmem:[#allocation4] sm:$0xff] }
  0x17   : > { %v232_v21 = vld [vmem:[#allocation5] sm:$0xff] }
  0x83   : > { %v224_v12 = vpop.permute.xlu1 %223 }
  0x84   : > { %v194_v7 = vpop.xlane.xlu0 %193  ;;  %vm225_vm2 = vcmp.eq.s32.totalorder %v218_v13, %v224_v12 }
  0x85   : > { %v195_v8 = vmax.f32 %v190_v6, %v194_v7  ;;  %v226_v14 = vsel %vm225_vm2, %v188_v1, 0.0  ;;  %v235_v22 = vpop.xlane.xlu2 %234 }
  0x86   : > { %v227_v15 = vsel %vm191_vm1, %v226_v14, 0.0  ;;  %v236_v23 = vadd.f32 %v235_v22, %v232_v21 }
  0x87   : > { %v197_v9 = vsub.f32 %v190_v6, %v195_v8  ;;  %215 = vst.msk [vmem:[#allocation2] sm:$0xff] %vm183_vm0, %v195_v8  ;;  %203 = vperm.xlu0 %368, %v195_v8   ;;  %228 = vadd.xlane.f32.xlu2 %v227_v15 }
  0x88   : > { %237 = vst.msk [vmem:[#allocation5] sm:$0xff] %vm183_vm0, %v236_v23 }
  0x89   : > { %v198_v27 = vmul.f32 1.442695, %v197_v9 }
  0x8e   : > { %v241_v37 = vld [vmem:[#allocation2] sm:$0xff] }
  0x8f   : > { %v248_v35 = vld [vmem:[#allocation5] sm:$0xff] }
  0x90   : > { %v249_v40 = vmul.f32 0.03125, %v248_v35 }
  0xf9   : > { %v204_v16 = vpop.permute.xlu0 %203 }
  0xfa   : > { %v206_v17 = vsub.f32 %v188_v1, %v204_v16  ;;  %v229_v25 = vpop.xlane.xlu2 %228 }
  0xfb   : > { %v230_v26 = vadd.f32 %v229_v25, %v221_v24 }
  0xfc   : > { %v207_v18 = vmul.f32 1.442695, %v206_v17 }
  0xfd   : > { %231 = vst.msk [vmem:[#allocation4] sm:$0xff] %vm183_vm0, %v230_v26 }
  0xfe   : > { %370 = vpow2.f32 %v207_v18 }
  0xff   : > { %372 = vpow2.f32 %v198_v27 }
 0x104   : > { %v371_v19 = vpop.eup %370  ;;  %v246_v38 = vld [vmem:[#allocation4] sm:$0xff] }
 0x105   : > { %v209_v20 = vsel %vm191_vm1, %v371_v19, 0.0  ;;  %v373_v28 = vpop.eup %372 }
 0x106   : > { %210 = vadd.xlane.f32.xlu1 %v209_v20  ;;  %v200_v30 = vmul.f32 %v373_v28, %v196_v29 }
 0x179   : > { %v211_v31 = vpop.xlane.xlu1 %210 }
 0x17a   : > { %v212_v32 = vadd.f32 %v211_v31, %v200_v30 }
 0x17c   : > { %214 = vst.msk [vmem:[#allocation3] sm:$0xff] %vm183_vm0, %v212_v32 }
 0x183   : > { %v242_v33 = vld [vmem:[#allocation3] sm:$0xff] }
 0x184   : > { %374 = vlog2.f32 %v242_v33 }
 0x18a   : > { %v375_v34 = vpop.eup %374 }
 0x18b   : > { %v244_v36 = vmul.f32 0.6931472, %v375_v34 }
 0x18d   : > { %v245_v39 = vadd.f32 %v244_v36, %v241_v37 }
 0x18f   : > { %v250_v41 = vsub.f32 %v245_v39, %v249_v40  ;;  %v247_v42 = vsub.f32 %v245_v39, %v246_v38 }
 0x191   : > { %v252_v43 = vmul.f32 0.1, %v250_v41  ;;  %v251_v44 = vmul.f32 0.9, %v247_v42 }
 0x193   : > { %v253_v45 = vadd.f32 %v252_v43, %v251_v44 }
 0x195   : > { %254 = vst.msk [vmem:[%s178_s22] sm:$0xff] %vm183_vm0, %v253_v45 }
 0x196 PF: > { %s12_s11 = sadd.s32 1, %s398_s11   ;;  %s475_s9 = smov %s394_s10 }
 0x197   : > { %p9_p5 = scmp.ge.s32.totalorder %s12_s11, 4   ;;  %s476_s10 = smov %s478_s12 }
 0x199   :  { %11 = sbr.rel (!%p9_p5) target bundleno = 2 (0x2), region = 69 }

</bundles_post_ra>
